<compile_context>
chip_gen: v7x
topology: tpu7x:2x2x1
jax: 0.10.0
libtpu: 0.0.40
codegen_flags: <defaults>
</compile_context>

<pallas_src>
import functools
import math

import jax
import jax.numpy as jnp
from jax.experimental import pallas as pl
from jax.experimental.pallas import tpu as pltpu

_LANE = 128


def _l2norm_kernel(x_ref, o_ref, *, eps: float):
    """Per-tile kernel: L2-normalize each row over the last (hidden) axis.

    Reduction and scaling are done in f32 (single final cast to the output
    dtype); rsqrt goes to the EUP slot and is effectively free here.
    """
    x = x_ref[...]
    xf = x.astype(jnp.float32)
    sq = jnp.sum(xf * xf, axis=-1, keepdims=True)      # f32 accumulate
    inv = jax.lax.rsqrt(sq + eps)                       # EUP rsqrt
    o_ref[...] = (xf * inv).astype(o_ref.dtype)         # f32 scale, one cast


def _sublane_tile(dtype) -> int:
    itemsize = jnp.dtype(dtype).itemsize
    return max(8, 32 // max(itemsize, 1))   # f32->8, bf16->16, int8/fp8->32


def _vmem_capacity_bytes() -> int:
    """Chip VMEM capacity; conservative (v7x per-TC) fallback if unknown."""
    try:
        cap = getattr(pltpu.get_tpu_info(), "vmem_capacity_bytes", None)
        if cap:
            return int(cap)
    except Exception:
        pass
    return 64 << 20


def _choose_tile_m(rows: int, h: int, dtype, vmem_cap: int) -> int:
    """Pick a sublane-aligned row tile targeting multi-MiB blocks.

    Block size is the main knob for this HBM-bound op: ~8 MiB of input data
    per block on 128 MiB-VMEM chips (v5e/v6e), ~4 MiB on v7x (64 MiB VMEM),
    which lands at ~85% of the HBM roofline vs ~29% for sub-MiB tiles.
    """
    sub = _sublane_tile(dtype)
    itemsize = jnp.dtype(dtype).itemsize
    target_block_bytes = (8 << 20) if vmem_cap >= (96 << 20) else (4 << 20)
    tile = target_block_bytes // max(h * itemsize, 1)
    tile = max(sub, (tile // sub) * sub)
    if tile >= rows:
        tile = rows
        if rows >= 2 * sub:
            # Split into >=2 blocks so v7x's two TensorCores both get work
            # and DMA/compute overlap; negligible cost on 1-TC chips.
            tile = ((rows + 1) // 2 + sub - 1) // sub * sub
    return tile


def _l2_normalize_rows(x2d: jax.Array, eps: float = 1e-12,
                       donate_input: bool = False) -> jax.Array:
    """L2-normalize rows of a (rows, hidden) array; hidden % 128 == 0."""
    rows, h = x2d.shape
    vmem_cap = _vmem_capacity_bytes()
    tile_m = _choose_tile_m(rows, h, x2d.dtype, vmem_cap)
    itemsize = jnp.dtype(x2d.dtype).itemsize

    # VMEM needed: double-buffered in + out tiles plus one f32 temporary,
    # with margin; never request within ~16 MiB of the chip's physical VMEM
    # (leaves room for compiler-internal scratch, matters on v7x's 64 MiB).
    need = tile_m * h * (4 * itemsize + 4)
    vmem_limit = int(min(max(vmem_cap - (16 << 20), 32 << 20),
                         max(need + (8 << 20), 32 << 20)))

    kernel = functools.partial(_l2norm_kernel, eps=eps)

    return pl.pallas_call(
        kernel,
        out_shape=jax.ShapeDtypeStruct((rows, h), x2d.dtype),
        grid=(pl.cdiv(rows, tile_m),),
        in_specs=[pl.BlockSpec((tile_m, h), lambda i: (i, 0))],
        out_specs=pl.BlockSpec((tile_m, h), lambda i: (i, 0)),
        # Donate the input HBM buffer when the caller no longer needs the
        # un-normalized features (halves peak activation memory); off by
        # default so callers can keep the original tensor.
        input_output_aliases=({0: 0} if donate_input else {}),
        compiler_params=pltpu.CompilerParams(
            dimension_semantics=("parallel",),   # v7x: shard rows over 2 TCs
            vmem_limit_bytes=vmem_limit,
        ),
    )(x2d)


class BaseLeverLM:
    """JAX/Pallas counterpart of the PyTorch BaseLeverLM base class."""

    def __init__(self, adapter: bool = False, norm: bool = False,
                 query_encoding_flag: list = None,
                 icd_encoding_flag: list = None) -> None:
        if query_encoding_flag is None:
            query_encoding_flag = []
        self._adapter = adapter
        self._norm = norm
        self.query_encoding_flag = query_encoding_flag
        self.icd_encoding_flag = icd_encoding_flag
        # Base class registers no parameters (mirrors nn.Module __init__).
        self.params = {}

    def freeze_prefix(self, freeze_prefix_list):
        # No trainable parameters at the base-class level; kept for API parity.
        if freeze_prefix_list is None:
            return
        self._frozen_prefixes = tuple(freeze_prefix_list)

    def _encode(self, x: jax.Array, eps: float = 1e-12) -> jax.Array:
        """Optional L2-normalization of features over the hidden dim.

        NOTE: uses rsqrt(sum(x^2) + eps), matching x / x.norm(dim=-1); this
        differs from torch.nn.functional.normalize's max(norm, eps) clamp
        only for near-zero rows.
        """
        if not self._norm:
            # Pass-through: skip the kernel entirely (no HBM read/write).
            return x

        h = x.shape[-1]
        if h < _LANE:
            # Tiny hidden: masked partial stores + <25% lane utilization make
            # a standalone Pallas pass slower than letting XLA fuse plain jnp.
            xf = x.astype(jnp.float32)
            inv = jax.lax.rsqrt(jnp.sum(xf * xf, axis=-1, keepdims=True) + eps)
            return (xf * inv).astype(x.dtype)

        lead = x.shape[:-1]
        rows = math.prod(lead) if lead else 1
        x2d = x.reshape(rows, h)

        # Lane-dense stores: pad hidden to a multiple of 128.  Zero padding
        # does not change the row norms; padded columns are sliced off after.
        h_pad = ((h + _LANE - 1) // _LANE) * _LANE
        padded = h_pad != h
        if padded:
            x2d = jnp.pad(x2d, ((0, 0), (0, h_pad - h)))

        # The padded temporary is dead after the call, so donating it is safe.
        out2d = _l2_normalize_rows(x2d, eps=eps, donate_input=padded)
        if padded:
            out2d = out2d[:, :h]
        return out2d.reshape(*lead, h)

    def __call__(self, query_input: jax.Array) -> jax.Array:
        # Base-class forward defines no architecture; expose the shared
        # feature-encoding path governed by the base-class flags.
        return self._encode(query_input)

    def generation(self, *args, **kwargs):
        # Mirrors @torch.inference_mode() abstract generation().
        raise NotImplementedError


def _reference(x: jax.Array, norm: bool) -> jax.Array:
    if not norm:
        return x
    xf = x.astype(jnp.float32)
    xf = xf * jax.lax.rsqrt(jnp.sum(xf * xf, axis=-1, keepdims=True) + 1e-12)
    return xf.astype(x.dtype)


if __name__ == "__main__":
    key = jax.random.PRNGKey(0)
    k1, k2, k3, k4 = jax.random.split(key, 4)

    model_norm = BaseLeverLM(adapter=False, norm=True,
                             query_encoding_flag=["image"],
                             icd_encoding_flag=["image", "text"])
    model_id = BaseLeverLM(adapter=False, norm=False)

    # Primary small-shape check (lane-dense hidden -> Pallas path).
    x = jax.random.normal(k1, (2, 8, 128), dtype=jnp.float32)
    y = jax.block_until_ready(model_norm(x))
    assert y.shape == x.shape
    assert jnp.allclose(y, _reference(x, True), atol=1e-5, rtol=1e-5)

    # norm=False is an exact pass-through (no kernel launched).
    y_id = jax.block_until_ready(model_id(x))
    assert jnp.array_equal(y_id, x)

    # Tiny hidden (< 128): fused jnp fallback path.
    x_small = jax.random.normal(k2, (2, 8, 32), dtype=jnp.float32)
    y_small = jax.block_until_ready(model_norm(x_small))
    assert jnp.allclose(y_small, _reference(x_small, True), atol=1e-5, rtol=1e-5)

    # hidden >= 128 but not a multiple of 128: padded lane-dense Pallas path.
    x_odd = jax.random.normal(k3, (2, 8, 160), dtype=jnp.float32)
    y_odd = jax.block_until_ready(model_norm(x_odd))
    assert jnp.allclose(y_odd, _reference(x_odd, True), atol=1e-5, rtol=1e-5)

    # Multi-block (pipelined) path + bf16 accuracy of the f32-scale epilogue.
    x_big = jax.random.normal(k4, (4, 512, 128), dtype=jnp.bfloat16)
    y_big = jax.block_until_ready(model_norm(x_big))
    assert jnp.allclose(y_big.astype(jnp.float32),
                        _reference(x_big, True).astype(jnp.float32),
                        atol=2e-2, rtol=2e-2)

    print("KERNEL_OK")
</pallas_src>

<mosaic_0001>
module attributes {stable_mosaic.version = 11 : i64} {
  func.func @_l2norm_kernel(%arg0: i32, %arg1: memref<8x128xf32, #tpu.memory_space<vmem>>, %arg2: memref<8x128xf32, #tpu.memory_space<vmem>>) attributes {dimension_semantics = [#tpu.dimension_semantics<parallel>], iteration_bounds = array<i64: 2>, scalar_prefetch = 0 : i64, scratch_operands = 0 : i64, tpu.core_type = #tpu.core_type<tc>, window_params = [{transform_indices = @transform_0, window_bounds = array<i64: 8, 128>}, {transform_indices = @transform_1, window_bounds = array<i64: 8, 128>}]} {
    %c0 = arith.constant 0 : index
    %c0_0 = arith.constant 0 : index
    %0 = vector.load %arg1[%c0, %c0_0] : memref<8x128xf32, #tpu.memory_space<vmem>>, vector<8x128xf32>
    %1 = arith.mulf %0, %0 : vector<8x128xf32>
    %cst = arith.constant dense<0.000000e+00> : vector<8xf32>
    %2 = vector.multi_reduction <add>, %1, %cst [1] : vector<8x128xf32> to vector<8xf32>
    %3 = vector.shape_cast %2 : vector<8xf32> to vector<8x1xf32>
    %cst_1 = arith.constant 9.99999996E-13 : f32
    %4 = vector.broadcast %cst_1 : f32 to vector<8x1xf32>
    %5 = arith.addf %3, %4 : vector<8x1xf32>
    %6 = math.rsqrt %5 : vector<8x1xf32>
    %7 = vector.broadcast %6 : vector<8x1xf32> to vector<8x128xf32>
    %8 = arith.mulf %0, %7 : vector<8x128xf32>
    %c0_2 = arith.constant 0 : index
    %c0_3 = arith.constant 0 : index
    %9 = vector.load %arg2[%c0_2, %c0_3] : memref<8x128xf32, #tpu.memory_space<vmem>>, vector<8x128xf32>
    tpu.vector_store %arg2[%c0_2, %c0_3], %8 {strides = array<i32>} : memref<8x128xf32, #tpu.memory_space<vmem>>, vector<8x128xf32>,
    return
  }
  func.func @transform_0(%arg0: i32) -> (i32, i32) {
    %c0_i32 = arith.constant 0 : i32
    %c0_i32_0 = arith.constant 0 : i32
    return %arg0, %c0_i32 : i32, i32
  }
  func.func @transform_1(%arg0: i32) -> (i32, i32) {
    %c0_i32 = arith.constant 0 : i32
    %c0_i32_0 = arith.constant 0 : i32
    return %arg0, %c0_i32 : i32, i32
  }
}

</mosaic_0001>

<bundles_post_ra>
// kernel: tpu_custom_call.1
= control target key start
LH: loop header
LB: loop body
LE: loop exit
PB: predicated region body
PF: predicated region fallthrough
CT: control target
= control target key end

     0   :  { %6 = vsyncpa [#allocation3], 0  ;;  %s555_s0 = inlined_call_operand.hbm [shape: f32[16,128], index: 0, kind: input, shape index: {}]   ;;  %s556_s1 = inlined_call_operand.hbm [shape: f32[16,128], index: 1, kind: output, shape index: {}]  }
   0x1   :  { %8 = vsyncpa [#allocation3 + $0x1], 0 }
   0x2   :  { %9 = vsyncpa [#allocation4], 0 }
   0x3   :  { %11 = vsyncpa [#allocation4 + $0x1], 0  ;;  %s394_s6 = smov 0   ;;  %s396_s7 = smov 0  }
   0x4   :  { %s398_s8 = smov 0   ;;  %s400_s9 = smov 0  }
   0x5 LB: > { %s415_s10 = sadd.s32 4294967295, %s380_s9   ;;  %s224_s11 = sadd.s32 4294967294, %s380_s9   ;;  %s380_s9 = sphi %s400_s9, %s571_s9   ;;  %s376_s8 = sphi %s398_s8, %s570_s8   ;;  %s372_s7 = sphi %s396_s7, %s569_s7   ;;  %s368_s6 = sphi %s394_s6, %s568_s6  }
   0x6   : > { %s419_s12 = sadd.s32 1, %s380_s9   ;;  %s24_s13 = sadd.s32 1, %s376_s8 }
   0x7   : > { %s21_s14 = ssub.s32 %s380_s9, %s419_s12  ;;  %p31_p0 = scmp.ne.s32.totalorder %s376_s8, %s372_s7 }
   0x8   : > { %p22_p1 = scmp.eq.s32.totalorder %s21_s14, 0  ;;  %p32_p2 = scmp.eq.s32.totalorder %s380_s9, 0 }
   0x9   : > { %p37_p3 = scmp.ne.s32.totalorder %s372_s7, %s368_s6  ;;  %p38_p4 = scmp.eq.s32.totalorder %s415_s10, 0 }
   0xa   : > { %s431_s15 = scalar_select %p22_p1, %s376_s8, %s24_s13  }
   0xb   : > { %p433_p5 = por %p32_p2, %p31_p0  ;;  %p437_p6 = por %p38_p4, %p37_p3 }
   0xc   : > { %p61_p7 = scmp.eq.s32.totalorder %s415_s10, 1  ;;  %p67_p8 = scmp.eq.s32.totalorder %s224_s11, 1 }
   0xd   : > { %p248_p10 = scmp.lt.s32.totalorder %s380_s9, 2  ;;  %s87_s20 = sand.u32 1, %s376_s8  }
   0xe   : > { %p444_p11 = por %p61_p7, %p31_p0  ;;  %p448_p12 = por %p67_p8, %p37_p3 }
   0xf   : > { %s228_s21 = sshll.u32 %s380_s9, 7  ;;  %s227_s22 = sshll.u32 %s87_s20, 3 }
  0x10   : > { %s560_s18 = scalar_select %p444_p11, 1, 0 }
  0x11   : > { %s561_s19 = scalar_select %p448_p12, 1, 0 }
  0x12   : > { %s457_s25 = scalar_lea.hbm %s555_s0, %s228_s21  ;;  %s91_s26 = scalar_lea.vmem [#allocation2], %s227_s22 }
  0x13   : > { %s98_s27 = sshll.u32 %s91_s26, 4  ;;  %p461_p13 = pnand %p248_p10, %p433_p5  ;;  %s465_s27 = int_to_ptr.vmem [resolvable:$true] %s98_s27 }
  0x14   : > { %s88_s29 = scalar_lea.sflag [#allocation3], %s87_s20  ;;  %s284_s30 = scalar_lea.hbm %s457_s25, 128 }
  0x15   : > { %p285_p2 = scmp.ne.s32.totalorder %s457_s25, %s284_s30  ;;  %p286_p3 = pneg %p461_p13 }
  0x16   : > { %s289_s4 = scalar_lea.hbm %s555_s0, 256  ;;  %p290_p5 = scmp.lt.u32.totalorder %s457_s25, %s555_s0 }
  0x17   : > { %p287_p4 = pnand %p286_p3, %p285_p2  ;;  %p291_p8 = scmp.lt.u32.totalorder %s289_s4, %s284_s30 }
  0x18   : > { %p293_p9 = scmp.lt.u32.totalorder %s284_s30, %s457_s25 }
  0x19   : > { %p288_p7 = pneg %p287_p4  ;;  %p292_p10 = por %p291_p8, %p290_p5 }
  0x1b   : > { %p294_p0 = por %p293_p9, %p292_p10 }
  0x1d   : > { %p295_p1 = pnand %p294_p0, %p288_p7 }
  0x1f   : > { %298 = shalt.err (!%p295_p1)
}
  0x20   : > { %s299_s13 = scalar_lea.vmem %s465_s27, 128  ;;  %s382_s14 = smov [#allocation2]  }
  0x21   : > { %p300_p2 = scmp.ne.s32.totalorder %s465_s27, %s299_s13  ;;  %s304_s16 = sshll.u32 %s382_s14, 4  ;;  %s305_s16 = int_to_ptr.vmem [resolvable:$false] %s304_s16 }
  0x22   : > { %s306_s20 = scalar_lea.vmem %s305_s16, 256  ;;  %p307_p11 = scmp.lt.s32.totalorder %s465_s27, %s305_s16 }
  0x23   : > { %p302_p4 = pnand %p300_p2, %p286_p3  ;;  %p308_p5 = scmp.lt.s32.totalorder %s306_s20, %s299_s13 }
  0x25   : > { %p303_p12 = pneg %p302_p4  ;;  %p309_p8 = por %p308_p5, %p307_p11 }
  0x27   : > { %p310_p9 = pnand %p309_p8, %p303_p12 }
  0x29   : > { %313 = shalt.err (!%p310_p9)
}
  0x2a   : > { %243 = dma.hbm_to_vmem [thread:$0]  (!%p461_p13), %s457_s25, 128, %s465_s27, %s88_s29  }
  0x2b   : > { %p563_p0 = scmp.lt.s32.totalorder %s380_s9, 3  ;;  %p564_p1 = scmp.ge.s32.totalorder %s380_s9, 1 }
  0x2d   : > { %p104_p3 = pnand %p564_p1, %p563_p0 }
  0x2e   : > { %s499_s21 = sand.u32 (!%p104_p3), 1, %s372_s7  }
  0x2f   : > { %107 = sbr.rel (%p104_p3) target bundleno = 229 (0xe5), region = 24  ;;  %s230_s22 = sshll.u32 (!%p104_p3), %s499_s21, 3 }
  0x30   : > { %s110_s23 = scalar_lea.sflag (!%p104_p3), [#allocation3], %s499_s21  ;;  %s113_s24 = scalar_lea.vmem (!%p104_p3), [#allocation2], %s230_s22 }
  0x36   : > { %359 = dma.done.wait (%p437_p6), %s110_s23, 128  }
  0x37   : > { %361 = vsyncadd (%p437_p6), %s110_s23, 4294967168  ;;  %v132_v0 = vld [vmem:[%s113_s24] sm:$0xff]  ;;  %s233_s25 = sshll.u32 %s415_s10, 7  ;;  %s131_s26 = scalar_lea.vmem [#allocation5], %s230_s22 }
  0x38   : > { %v133_v1 = vmul.f32 %v132_v0, %v132_v0  ;;  %s154_s27 = sshll.u32 %s131_s26, 4  ;;  %s511_s30 = scalar_lea.hbm %s556_s1, %s233_s25  ;;  %s513_s27 = int_to_ptr.vmem [resolvable:$true] %s154_s27 }
  0x39   : > { %s141_s17 = scalar_lea.sflag [#allocation4], %s499_s21  ;;  %s314_s2 = scalar_lea.vmem %s513_s27, 128 }
  0x3a   : > { %134 = vadd.xlane.f32.xlu0 %v133_v1  ;;  %p315_p6 = scmp.ne.s32.totalorder %s513_s27, %s314_s2  ;;  %p565_p11 = scmp.ne.s32.totalorder %s560_s18, 0 }
  0x3b   : > { %s383_s10 = smov [#allocation5]  }
  0x3c   : > { %p316_p12 = pnand %p315_p6, %p565_p11  ;;  %s318_s3 = sshll.u32 %s383_s10, 4  ;;  %s319_s3 = int_to_ptr.vmem [resolvable:$false] %s318_s3 }
  0x3d   : > { %s320_s4 = scalar_lea.vmem %s319_s3, 256  ;;  %p321_p7 = scmp.lt.s32.totalorder %s513_s27, %s319_s3 }
  0x3e   : > { %p317_p13 = pneg %p316_p12  ;;  %p322_p10 = scmp.lt.s32.totalorder %s320_s4, %s314_s2 }
  0x40   : > { %p323_p2 = por %p322_p10, %p321_p7 }
  0x42   : > { %p324_p4 = pnand %p323_p2, %p317_p13 }
  0xc7   : > { %v135_v2 = vpop.xlane.xlu0 %134 }
  0xc8   : > { %v136_v3 = vadd.f32 1e-12, %v135_v2 }
  0xca   : > { %282 = vrsqrt.f32 %v136_v3 }
  0xd4   : > { %v283_v4 = vpop.eup %282 }
  0xd5   : > { %v138_v5 = vmul.f32 %v283_v4, %v132_v0 }
  0xd7   : > { %139 = vst [vmem:[%s131_s26] sm:$0xff] %v138_v5 }
  0xd8   : > { %327 = shalt.err (!%p324_p4)
}
  0xd9   : > { %s328_s5 = scalar_lea.hbm %s511_s30, 128  ;;  %s332_s14 = scalar_lea.hbm %s556_s1, 256 }
  0xda   : > { %p329_p5 = scmp.ne.s32.totalorder %s511_s30, %s328_s5  ;;  %p333_p0 = scmp.lt.u32.totalorder %s511_s30, %s556_s1 }
  0xdb   : > { %p334_p1 = scmp.lt.u32.totalorder %s332_s14, %s328_s5  ;;  %p336_p6 = scmp.lt.u32.totalorder %s328_s5, %s511_s30 }
  0xdc   : > { %p330_p8 = pnand %p329_p5, %p565_p11 }
  0xdd   : > { %p335_p3 = por %p334_p1, %p333_p0 }
  0xde   : > { %p331_p9 = pneg %p330_p8 }
  0xdf   : > { %p337_p12 = por %p336_p6, %p335_p3 }
  0xe1   : > { %p338_p13 = pnand %p337_p12, %p331_p9 }
  0xe3   : > { %341 = shalt.err (!%p338_p13)
}
  0xe4   : > { %238 = dma.vmem_to_hbm [thread:$0]  (%p565_p11), %s513_s27, 128, %s511_s30, %s141_s17  }
  0xe5 PF: > { %s166_s21 = sand.u32 1, %s368_s6   ;;  %p566_p7 = scmp.ne.s32.totalorder %s561_s19, 0 }
  0xe6   : > { %p567_p10 = scmp.ge.s32.totalorder %s380_s9, 2  ;;  %s167_s22 = scalar_lea.sflag [#allocation4], %s166_s21 }
  0xe8   : > { %p245_p2 = pnand %p567_p10, %p566_p7 }
  0xea   : > { %363 = dma.done.wait (!%p245_p2), %s167_s22, 128  }
  0xeb   : > { %365 = vsyncadd (!%p245_p2), %s167_s22, 4294967168  ;;  %p14_p4 = scmp.ge.s32.totalorder %s419_s12, 4   ;;  %s568_s6 = smov %s372_s7 }
  0xec   : > { %s569_s7 = smov %s376_s8  ;;  %s570_s8 = smov %s431_s15 }
  0xed   : > { %s571_s9 = smov %s419_s12  ;;  %16 = sbr.rel (!%p14_p4) target bundleno = 5 (0x5), region = 69 }
  0xf4   :  { %172 = vsyncpa [#allocation3], 1 }
  0xf5   :  { %174 = vsyncpa [#allocation3 + $0x1], 1 }
  0xf6   :  { %175 = vsyncpa [#allocation4], 1 }
  0xf7   :  { %177 = vsyncpa [#allocation4 + $0x1], 1 }

</bundles_post_ra>
